<compile_context>
chip_gen: v6e
topology: v6e:2x2x1
jax: 0.10.0
libtpu: 0.0.40
codegen_flags: <defaults>
</compile_context>

<pallas_src>
import numpy as np
import jax
import jax.numpy as jnp
from jax.experimental import pallas as pl
from jax.experimental.pallas import tpu as pltpu


# ----------------------- hyperparameters from the script -----------------------
HD = 5                       # DeepONet latent dimension (output of both nets)
HIDDEN = 62                  # hidden_layers_mlp = [62]
DIN_BRANCH = 6               # branch_net input_dim
DIN_TRUNK = 2                # trunk_net input_dim (x, y coordinates)
TN = 512                     # coordinate tile (lane-dense: multiple of 128)


# --------------------------------- Pallas kernel --------------------------------
def _deeponet_trunk_kernel(yb_ref, xtT_ref, wt1T_ref, wt2T_ref, y_ref):
    """Trunk MLP (transposed layout) + final contraction for one (B, TN) tile.

    yb_ref   : (B, HD)                 branch embedding, precomputed in wrapper
    xtT_ref  : (DIN_TRUNK, TN)         trunk coordinates, transposed (lane-dense)
    wt1T_ref : (HIDDEN, DIN_TRUNK + 1) [W1^T | b1] packed (bias = last column)
    wt2T_ref : (HD, HIDDEN + 1)        [W2^T | b2] packed (bias = last column)
    y_ref    : (B, TN)                 Y[b, n] = sum_i y_branch[b, i] * y_trunk[n, i]
    """
    # Static ref slices (free views) for weights / bias.
    w1t = wt1T_ref[:, :DIN_TRUNK]                       # (HIDDEN, DIN_TRUNK)
    b1c = wt1T_ref[:, DIN_TRUNK:DIN_TRUNK + 1]          # (HIDDEN, 1)
    w2t = wt2T_ref[:, :HIDDEN]                          # (HD, HIDDEN)
    b2c = wt2T_ref[:, HIDDEN:HIDDEN + 1]                # (HD, 1)

    # Hidden layer: (HIDDEN, DIN_TRUNK) @ (DIN_TRUNK, TN) -> (HIDDEN, TN), TN on lanes.
    h_t = jnp.tanh(jnp.dot(w1t, xtT_ref[...],
                           preferred_element_type=jnp.float32) + b1c)       # MXU + EUP
    # Output layer: (HD, HIDDEN) @ (HIDDEN, TN) -> (HD, TN).
    yt_t = jnp.dot(w2t, h_t, preferred_element_type=jnp.float32) + b2c      # MXU

    # einsum('bi,ni->bn') == yb @ yt^T ; yt_t is already (HD, TN).
    y_ref[...] = jnp.dot(yb_ref[...], yt_t,
                         preferred_element_type=jnp.float32)                # (B, TN)


def _pack_linear_T(w, b):
    """(Din, Dout) weight + (Dout,) bias -> (Dout, Din+1) slab: [W^T | b column]."""
    return jnp.concatenate([w.T, b[:, None]], axis=1).astype(jnp.float32)


def deeponet_mlp_forward(x_branch, x_trunk, branch_params, trunk_params, tn=TN):
    """branch_params / trunk_params: (W1, b1, W2, b2) with W:(Din,Dout), b:(Dout,)."""
    B = x_branch.shape[0]
    N = x_trunk.shape[0]

    # ---- branch MLP hoisted out of the kernel (tiny: B x 6 -> 62 -> 5) ----
    wb1, bb1, wb2, bb2 = (p.astype(jnp.float32) for p in branch_params)
    xb = x_branch.astype(jnp.float32)
    yb = jnp.tanh(xb @ wb1 + bb1) @ wb2 + bb2                       # (B, HD)

    # ---- trunk path: transposed, lane-dense layout ----
    xt_t = x_trunk.astype(jnp.float32).T                            # (DIN_TRUNK, N)
    wt1_t = _pack_linear_T(trunk_params[0], trunk_params[1])        # (62, 3)
    wt2_t = _pack_linear_T(trunk_params[2], trunk_params[3])        # (5, 63)

    grid = (pl.cdiv(N, tn),)

    in_specs = [
        pl.BlockSpec((B, HD), lambda n: (0, 0)),                    # branch embedding
        pl.BlockSpec((DIN_TRUNK, tn), lambda n: (0, n)),            # coordinate tile (2, TN)
        pl.BlockSpec(wt1_t.shape, lambda n: (0, 0)),                # packed trunk W1
        pl.BlockSpec(wt2_t.shape, lambda n: (0, 0)),                # packed trunk W2
    ]
    out_spec = pl.BlockSpec((B, tn), lambda n: (0, n))              # lane-dense output tile

    cost = pl.CostEstimate(
        flops=int(2 * N * (HIDDEN * DIN_TRUNK + HD * HIDDEN + B * HD)),
        transcendentals=int(HIDDEN * N),
        bytes_accessed=int(4 * (DIN_TRUNK * N + B * HD
                                + wt1_t.size + wt2_t.size + B * N)),
    )

    return pl.pallas_call(
        _deeponet_trunk_kernel,
        out_shape=jax.ShapeDtypeStruct((B, N), jnp.float32),
        grid=grid,
        in_specs=in_specs,
        out_specs=out_spec,
        compiler_params=pltpu.CompilerParams(
            dimension_semantics=("parallel",)),                     # both TCs on v7x
        cost_estimate=cost,
    )(yb, xt_t, wt1_t, wt2_t)


# ------------------------------ parameter creation ------------------------------
def make_mlp_params(key, din, dhid, dout, scale=0.1):
    key, k1, k2, k3, k4 = jax.random.split(key, 5)
    w1 = jax.random.normal(k1, (din, dhid), dtype=jnp.float32) * scale
    b1 = jax.random.normal(k2, (dhid,), dtype=jnp.float32) * scale
    w2 = jax.random.normal(k3, (dhid, dout), dtype=jnp.float32) * scale
    b2 = jax.random.normal(k4, (dout,), dtype=jnp.float32) * scale
    return (w1, b1, w2, b2), key


# ------------------------------ pure-JAX reference ------------------------------
def _mlp_ref(x, params):
    w1, b1, w2, b2 = params
    return jnp.tanh(x @ w1 + b1) @ w2 + b2


def deeponet_mlp_ref(x_branch, x_trunk, branch_params, trunk_params):
    yb = _mlp_ref(x_branch, branch_params)
    yt = _mlp_ref(x_trunk, trunk_params)
    return jnp.einsum('bi,ni->bn', yb, yt)


# -------------------------------------- main -------------------------------------
if __name__ == "__main__":
    key = jax.random.PRNGKey(0)

    B = 8                     # number of branch samples (rows of loading-parameter matrix)

    branch_params, key = make_mlp_params(key, DIN_BRANCH, HIDDEN, HD)
    trunk_params, key = make_mlp_params(key, DIN_TRUNK, HIDDEN, HD)

    key, kb, kt1, kt2 = jax.random.split(key, 4)
    x_branch = jax.random.uniform(kb, (B, DIN_BRANCH), dtype=jnp.float32,
                                  minval=-1.0, maxval=1.0)

    # Case 1: N a multiple of the tile (2 tiles of 512 -> both TCs busy on v7x).
    N1 = 1024
    x_trunk1 = jax.random.uniform(kt1, (N1, DIN_TRUNK), dtype=jnp.float32,
                                  minval=0.0, maxval=1.0)
    y1 = jax.block_until_ready(
        deeponet_mlp_forward(x_branch, x_trunk1, branch_params, trunk_params))
    y1_ref = deeponet_mlp_ref(x_branch, x_trunk1, branch_params, trunk_params)
    np.testing.assert_allclose(np.asarray(y1), np.asarray(y1_ref), rtol=2e-5, atol=2e-6)

    # Case 2: ragged N (not a multiple of TN) -> checks masked writeback of the
    # partial last tile (no garbage leaks into valid columns).
    N2 = 640
    x_trunk2 = jax.random.uniform(kt2, (N2, DIN_TRUNK), dtype=jnp.float32,
                                  minval=0.0, maxval=1.0)
    y2 = jax.block_until_ready(
        deeponet_mlp_forward(x_branch, x_trunk2, branch_params, trunk_params))
    y2_ref = deeponet_mlp_ref(x_branch, x_trunk2, branch_params, trunk_params)
    np.testing.assert_allclose(np.asarray(y2), np.asarray(y2_ref), rtol=2e-5, atol=2e-6)

    print("KERNEL_OK")
</pallas_src>

<mosaic_0001>
module attributes {stable_mosaic.version = 11 : i64} {
  func.func @_deeponet_trunk_kernel(%arg0: i32, %arg1: memref<8x5xf32, #tpu.memory_space<vmem>>, %arg2: memref<2x512xf32, #tpu.memory_space<vmem>>, %arg3: memref<62x3xf32, #tpu.memory_space<vmem>>, %arg4: memref<5x63xf32, #tpu.memory_space<vmem>>, %arg5: memref<8x512xf32, #tpu.memory_space<vmem>>) attributes {dimension_semantics = [#tpu.dimension_semantics<parallel>], iteration_bounds = array<i64: 2>, scalar_prefetch = 0 : i64, scratch_operands = 0 : i64, tpu.core_type = #tpu.core_type<tc>, window_params = [{pipeline_mode = #tpu.pipeline_mode<synchronous>, transform_indices = @transform_0, window_bounds = array<i64: 8, 5>}, {transform_indices = @transform_1, window_bounds = array<i64: 2, 512>}, {pipeline_mode = #tpu.pipeline_mode<synchronous>, transform_indices = @transform_2, window_bounds = array<i64: 62, 3>}, {pipeline_mode = #tpu.pipeline_mode<synchronous>, transform_indices = @transform_3, window_bounds = array<i64: 5, 63>}, {transform_indices = @transform_4, window_bounds = array<i64: 8, 512>}]} {
    %c0 = arith.constant 0 : index
    %c0_0 = arith.constant 0 : index
    %0 = vector.load %arg3[%c0, %c0_0] : memref<62x3xf32, #tpu.memory_space<vmem>>, vector<62x2xf32>
    %c0_1 = arith.constant 0 : index
    %c2 = arith.constant 2 : index
    %1 = vector.load %arg3[%c0_1, %c2] : memref<62x3xf32, #tpu.memory_space<vmem>>, vector<62x1xf32>
    %c0_2 = arith.constant 0 : index
    %c0_3 = arith.constant 0 : index
    %2 = vector.load %arg4[%c0_2, %c0_3] : memref<5x63xf32, #tpu.memory_space<vmem>>, vector<5x62xf32>
    %c0_4 = arith.constant 0 : index
    %c62 = arith.constant 62 : index
    %3 = vector.load %arg4[%c0_4, %c62] : memref<5x63xf32, #tpu.memory_space<vmem>>, vector<5x1xf32>
    %c0_5 = arith.constant 0 : index
    %c0_6 = arith.constant 0 : index
    %4 = vector.load %arg2[%c0_5, %c0_6] : memref<2x512xf32, #tpu.memory_space<vmem>>, vector<2x512xf32>
    %cst = arith.constant dense<0.000000e+00> : vector<62x512xf32>
    %5 = tpu.matmul %0, %4, %cst {dimension_numbers = #tpu.dot_dimension_numbers<[1], [0], [0], [1], [0, 0, 1, 1], [], []>} : vector<62x2xf32>, vector<2x512xf32>, vector<62x512xf32> -> vector<62x512xf32>
    %6 = vector.broadcast %1 : vector<62x1xf32> to vector<62x512xf32>
    %7 = arith.addf %5, %6 : vector<62x512xf32>
    %8 = math.tanh %7 : vector<62x512xf32>
    %cst_7 = arith.constant dense<0.000000e+00> : vector<5x512xf32>
    %9 = tpu.matmul %2, %8, %cst_7 {dimension_numbers = #tpu.dot_dimension_numbers<[1], [0], [0], [1], [0, 0, 1, 1], [], []>} : vector<5x62xf32>, vector<62x512xf32>, vector<5x512xf32> -> vector<5x512xf32>
    %10 = vector.broadcast %3 : vector<5x1xf32> to vector<5x512xf32>
    %11 = arith.addf %9, %10 : vector<5x512xf32>
    %c0_8 = arith.constant 0 : index
    %c0_9 = arith.constant 0 : index
    %12 = vector.load %arg1[%c0_8, %c0_9] : memref<8x5xf32, #tpu.memory_space<vmem>>, vector<8x5xf32>
    %cst_10 = arith.constant dense<0.000000e+00> : vector<8x512xf32>
    %13 = tpu.matmul %12, %11, %cst_10 {dimension_numbers = #tpu.dot_dimension_numbers<[1], [0], [0], [1], [0, 0, 1, 1], [], []>} : vector<8x5xf32>, vector<5x512xf32>, vector<8x512xf32> -> vector<8x512xf32>
    %c0_11 = arith.constant 0 : index
    %c0_12 = arith.constant 0 : index
    %14 = vector.load %arg5[%c0_11, %c0_12] : memref<8x512xf32, #tpu.memory_space<vmem>>, vector<8x512xf32>
    tpu.vector_store %arg5[%c0_11, %c0_12], %13 {strides = array<i32>} : memref<8x512xf32, #tpu.memory_space<vmem>>, vector<8x512xf32>,
    return
  }
  func.func @transform_0(%arg0: i32) -> (i32, i32) {
    %c0_i32 = arith.constant 0 : i32
    %c0_i32_0 = arith.constant 0 : i32
    %c0_i32_1 = arith.constant 0 : i32
    return %c0_i32, %c0_i32_0 : i32, i32
  }
  func.func @transform_1(%arg0: i32) -> (i32, i32) {
    %c0_i32 = arith.constant 0 : i32
    %c0_i32_0 = arith.constant 0 : i32
    return %c0_i32, %arg0 : i32, i32
  }
  func.func @transform_2(%arg0: i32) -> (i32, i32) {
    %c0_i32 = arith.constant 0 : i32
    %c0_i32_0 = arith.constant 0 : i32
    %c0_i32_1 = arith.constant 0 : i32
    return %c0_i32, %c0_i32_0 : i32, i32
  }
  func.func @transform_3(%arg0: i32) -> (i32, i32) {
    %c0_i32 = arith.constant 0 : i32
    %c0_i32_0 = arith.constant 0 : i32
    %c0_i32_1 = arith.constant 0 : i32
    return %c0_i32, %c0_i32_0 : i32, i32
  }
  func.func @transform_4(%arg0: i32) -> (i32, i32) {
    %c0_i32 = arith.constant 0 : i32
    %c0_i32_0 = arith.constant 0 : i32
    return %c0_i32, %arg0 : i32, i32
  }
}

</mosaic_0001>

<bundles_post_ra>
// kernel: tpu_custom_call.1
= control target key start
LH: loop header
LB: loop body
LE: loop exit
PB: predicated region body
PF: predicated region fallthrough
CT: control target
= control target key end

     0   :  { %9 = vsyncpa [#allocation3], 0  ;;  %s1457_s0 = inlined_call_operand.vmem [shape: f32[8,5], index: 0, kind: input, shape index: {}]   ;;  %s1458_s1 = inlined_call_operand.vmem [shape: f32[2,1024], index: 1, kind: input, shape index: {}]   ;;  %s1459_s2 = inlined_call_operand.vmem [shape: f32[62,3], index: 2, kind: input, shape index: {}]   ;;  %s1460_s3 = inlined_call_operand.vmem [shape: f32[5,63], index: 3, kind: input, shape index: {}]   ;;  %s1461_s4 = inlined_call_operand.hbm [shape: f32[8,1024], index: 4, kind: output, shape index: {}]  }
   0x1   :  { %11 = vsyncpa [#allocation3 + $0x1], 0  ;;  %s1200_s15 = smov 0   ;;  %s1202_s16 = smov 0  }
   0x2   :  { %s1204_s17 = smov 0   ;;  %s1206_s18 = smov 0  }
   0x3 LB: > { %s1221_s19 = sadd.s32 4294967295, %s1168_s18   ;;  %s952_s20 = sadd.s32 4294967294, %s1168_s18   ;;  %s1168_s18 = sphi %s1206_s18, %s1467_s18   ;;  %s1164_s17 = sphi %s1204_s17, %s1466_s17   ;;  %s1160_s16 = sphi %s1202_s16, %s1465_s16   ;;  %s1156_s15 = sphi %s1200_s15, %s1464_s15  }
   0x4   : > { %s1225_s21 = sadd.s32 1, %s1168_s18   ;;  %s113_s22 = sadd.s32 1, %s1164_s17 }
   0x5   : > { %s110_s23 = ssub.s32 %s1168_s18, %s1225_s21  ;;  %p123_p0 = scmp.ne.s32.totalorder %s1164_s17, %s1160_s16 }
   0x6   : > { %p111_p1 = scmp.eq.s32.totalorder %s110_s23, 0  ;;  %p124_p2 = scmp.eq.s32.totalorder %s1221_s19, 1 }
   0x7   : > { %p129_p3 = scmp.ne.s32.totalorder %s1160_s16, %s1156_s15  ;;  %p130_p4 = scmp.eq.s32.totalorder %s952_s20, 1 }
   0x8   : > { %s1236_s24 = scalar_select %p111_p1, %s1164_s17, %s113_s22  }
   0x9   : > { %p1238_p5 = por %p124_p2, %p123_p0  ;;  %p1242_p6 = por %p130_p4, %p129_p3 }
   0xa   : > { %p955_p7 = scmp.ge.s32.totalorder %s1168_s18, 1  ;;  %p166_p8 = scmp.lt.s32.totalorder %s1168_s18, 3 }
   0xc   : > { %p167_p9 = pnand %p955_p7, %p166_p8 }
   0xd   : > { %s957_s27 = sshll.u32 (!%p167_p9), %s1221_s19, 2  ;;  %s996_s11 = sshll.u32 (!%p167_p9), %s1221_s19, 9 }
   0xe   : > { %170 = sbr.rel (%p167_p9) target bundleno = 696 (0x2b8), region = 36  ;;  %p193_p10 = scmp.lt.s32.totalorder (!%p167_p9), %s957_s27, 7 }
   0xf   : > { %s1422_s22 = scalar_lea.hbm (!%p167_p9), %s1461_s4, %s996_s11  ;;  %s1174_s19 = smov (!%p167_p9), [#allocation2]  }
  0x10   : > { %s1112_s28 = sshll.u32 (!%p167_p9), %s1174_s19, 4  ;;  %s1113_s28 = int_to_ptr.vmem [resolvable:$false] %s1112_s28 }
  0x11   : > { %s1114_s29 = scalar_lea.vmem (!%p167_p9), %s1113_s28, 1024 }
  0x13   : > { %v254_v0 = vlaneseq  ;;  %v1170_v1 = vmov 1983009808   ;;  %v1171_v3 = vmov 0.0   ;;  %v204_v5 = vld [vmem:[%s1459_s2 + $0x28] sm:$0xff]  ;;  %v1172_v6 = vmov 2   ;;  %s1469_s27 = smov (!%p193_p10, %s957_s27), 7 }
  0x14   : > { %v252_v2 = vunpack.c.l.s4 %v1170_v1  ;;  %357 = vmatprep.mubr.f32.mxu0 %v1171_v3  ;;  %470 = vmatprep.mubr.f32.mxu1 %v1171_v3  ;;  %v206_v8 = vld [vmem:[%s1459_s2 + $0x38] sm:$0x3f]  ;;  %s958_s6 = sshll.u32 %s1469_s27, 1  ;;  %v203_v10 = vld [vmem:[%s1459_s2 + $0x20] sm:$0xff]  ;;  %v205_v12 = vld [vmem:[%s1459_s2 + $0x30] sm:$0xff]  ;;  %vm284_vm0 = vcmask 1041408  }
  0x15   : > { %v255_v4 = vshrl.u32 %v254_v0, 7  ;;  %1041 = vset.pattern.permute.xlu1 %v1172_v6  ;;  %1040 = vset.pattern.permute.xlu0 %v1172_v6  ;;  %s196_s9 = scalar_lea.vmem %s1458_s1, %s958_s6  ;;  %v201_v17 = vld [vmem:[%s1459_s2 + $0x10] sm:$0xff]  ;;  %v199_v18 = vld [vmem:[%s1459_s2] sm:$0xff]  ;;  %vm267_vm1 = vcmask 15360   ;;  %v202_v19 = vld [vmem:[%s1459_s2 + $0x18] sm:$0xff]  ;;  %v1173_v23 = vmov 62  }
  0x16   : > { %v253_v7 = vunpack.c.0.s8 %v252_v2  ;;  %236 = vperm.xlu1 %1041, %v204_v5   ;;  %246 = vperm.xlu0 %1040, %v206_v8   ;;  %v208_v11 = vld [vmem:[%s196_s9] sm:$0xff]  ;;  %v200_v21 = vld [vmem:[%s1459_s2 + $0x8] sm:$0xff]  ;;  %vm559_vm2 = vcmask 1045504   ;;  %vm556_vm3 = vcmask 506880   ;;  %vm719_vm4 = vcmask 1044480   ;;  %s189_s9 = sand.u32 1, %s1160_s16  }
  0x17   : > { %v250_v14 = vcombine.high %v208_v11, %v208_v11  ;;  %v1313_v22 = vld [vmem:[%s1460_s3] sm:$0x1f]  ;;  %vm715_vm5 = vcmask 39936   ;;  %s956_s10 = sshll.u32 %s189_s9, 5  ;;  %s879_s23 = scalar_lea.sflag [#allocation3], %s189_s9 }
  0x18   : > { %v256_v9 = vsub.s32 %v253_v7, %v255_v4  ;;  %s191_s12 = scalar_lea.vmem [#allocation2], %s956_s10 }
  0x19   : > { %s893_s13 = sshll.u32 %s191_s12, 4  ;;  %s894_s13 = int_to_ptr.vmem [resolvable:$true] %s893_s13 }
  0x1a   : > { %231 = vperm.xlu1 %1041, %v203_v10   ;;  %v257_v13 = vrot.slane %v208_v11, %v256_v9  ;;  %241 = vperm.xlu0 %1040, %v205_v12   ;;  %v264_v16 = vrot.slane %v250_v14, %v256_v9  ;;  %s1108_s27 = scalar_lea.vmem %s894_s13, 512  ;;  %p1115_p0 = scmp.lt.s32.totalorder %s894_s13, %s1113_s28 }
  0x1b   : > { %p1109_p11 = scmp.ne.s32.totalorder %s894_s13, %s1108_s27  ;;  %p1116_p1 = scmp.lt.s32.totalorder %s1114_s29, %s1108_s27 }
  0x1c   : > { %v265_v15 = vcombine.high %v257_v13, %v257_v13  ;;  %v266_v20 = vcombine.high %v264_v16, %v264_v16 }
  0x1d   : > { %p1110_p12 = pnand %p1109_p11, %p1238_p5  ;;  %p1117_p2 = por %p1116_p1, %p1115_p0 }
  0x1e   : > { %221 = vperm.xlu1 %1041, %v201_v17   ;;  %959 = vmatprep.subr.msk.mxu0 %vm284_vm0, %v265_v15 }
  0x1f   : > { %226 = vperm.xlu0 %1040, %v202_v19   ;;  %960 = vmatpush1.msk.msra.mxu0 %vm284_vm0, %v257_v13  ;;  %p1111_p13 = pneg %p1110_p12 }
  0x20   : > { %961 = vmatmul.mubr.msk.f32.vlgmr.msra.gmra.mxu0 %vm267_vm1, %v199_v18  ;;  %969 = vmatprep.subr.msk.mxu1 %vm284_vm0, %v266_v20 }
  0x21   : > { %970 = vmatpush1.msk.msra.mxu1 %vm284_vm0, %v264_v16  ;;  %363 = vmatprep.mubr.f32.mxu0 %v1171_v3  ;;  %p1118_p3 = pnand %p1117_p2, %p1111_p13 }
  0x22   : > { %971 = vmatmul.mubr.msk.f32.vlgmr.msra.gmra.mxu1 %vm267_vm1, %v199_v18  ;;  %211 = vperm.xlu1 %1041, %v199_v18  }
  0x23   : > { %476 = vmatprep.mubr.f32.mxu1 %v1171_v3  ;;  %216 = vperm.xlu0 %1040, %v200_v21  }
  0x24   : > { %962 = vmatmul.mubr.msk.f32.gmra.mxu0 %vm267_vm1, %v200_v21 }
  0x25   : > { %369 = vmatprep.mubr.f32.mxu0 %v1171_v3 }
  0x26   : > { %972 = vmatmul.mubr.msk.f32.gmra.mxu1 %vm267_vm1, %v200_v21 }
  0x27   : > { %482 = vmatprep.mubr.f32.mxu1 %v1171_v3  ;;  %1042 = vset.pattern.permute.xlu0 %v1173_v23 }
  0x28   : > { %963 = vmatmul.mubr.msk.f32.gmra.mxu0 %vm267_vm1, %v201_v17  ;;  %553 = vperm.xlu0 %1042, %v1313_v22  }
  0x29   : > { %375 = vmatprep.mubr.f32.mxu0 %v1171_v3 }
  0x2a   : > { %973 = vmatmul.mubr.msk.f32.gmra.mxu1 %vm267_vm1, %v201_v17 }
  0x2b   : > { %488 = vmatprep.mubr.f32.mxu1 %v1171_v3 }
  0x2c   : > { %964 = vmatmul.mubr.msk.f32.gmra.mxu0 %vm267_vm1, %v202_v19 }
  0x2d   : > { %381 = vmatprep.mubr.f32.mxu0 %v1171_v3 }
  0x2e   : > { %974 = vmatmul.mubr.msk.f32.gmra.mxu1 %vm267_vm1, %v202_v19 }
  0x2f   : > { %494 = vmatprep.mubr.f32.mxu1 %v1171_v3 }
  0x30   : > { %965 = vmatmul.mubr.msk.f32.gmra.mxu0 %vm267_vm1, %v203_v10 }
  0x31   : > { %387 = vmatprep.mubr.f32.mxu0 %v1171_v3 }
  0x32   : > { %975 = vmatmul.mubr.msk.f32.gmra.mxu1 %vm267_vm1, %v203_v10 }
  0x33   : > { %500 = vmatprep.mubr.f32.mxu1 %v1171_v3 }
  0x34   : > { %966 = vmatmul.mubr.msk.f32.gmra.mxu0 %vm267_vm1, %v204_v5 }
  0x35   : > { %393 = vmatprep.mubr.f32.mxu0 %v1171_v3 }
  0x36   : > { %976 = vmatmul.mubr.msk.f32.gmra.mxu1 %vm267_vm1, %v204_v5 }
  0x37   : > { %506 = vmatprep.mubr.f32.mxu1 %v1171_v3 }
  0x38   : > { %967 = vmatmul.mubr.msk.f32.gmra.mxu0 %vm267_vm1, %v205_v12 }
  0x39   : > { %399 = vmatprep.mubr.f32.mxu0 %v1171_v3 }
  0x3a   : > { %977 = vmatmul.mubr.msk.f32.gmra.mxu1 %vm267_vm1, %v205_v12 }
  0x3b   : > { %512 = vmatprep.mubr.f32.mxu1 %v1171_v3 }
  0x3c   : > { %968 = vmatmul.mubr.msk.f32.gmra.mxu0 %vm267_vm1, %v206_v8 }
  0x3d   : > { %636 = vmatprep.mubr.f32.mxu0 %v1171_v3 }
  0x3e   : > { %978 = vmatmul.mubr.msk.f32.gmra.mxu1 %vm267_vm1, %v206_v8 }
  0x3f   : > { %707 = vmatprep.mubr.f32.mxu1 %v1171_v3 }
  0x91   : > { %v1316_v24 = vpop.permute.xlu1 %236  ;;  %v1318_v25 = vpop.permute.xlu0 %246 }
  0x95   : > { %v1320_v26 = vpop.permute.xlu1 %231  ;;  %v1322_v28 = vpop.permute.xlu0 %241 }
  0x99   : > { %v1328_v33 = vpop.permute.xlu1 %221 }
  0x9a   : > { %v1332_v36 = vpop.permute.xlu0 %226 }
  0x9d   : > { %v1338_v41 = vpop.permute.xlu1 %211 }
  0x9e   : > { %v1342_v44 = vpop.permute.xlu0 %216 }
  0xe0   : > { %v359_v27 = vpop.f32.mrf.mxu0 }
  0xe1   : > { %v360_v47 = vadd.f32 %v359_v27, %v1338_v41 }
  0xe2   : > { %v361_v29 = vpop.f32.mrf.mxu0  ;;  %v1324_v30 = vpop.f32.mrf.mxu1 }
  0xe3   : > { %v362_v48 = vadd.f32 %v361_v29, %v1338_v41  ;;  %1044 = vtanh.f32 %v360_v47 }
  0xe4   : > { %v365_v31 = vpop.f32.mrf.mxu0  ;;  %v1326_v32 = vpop.f32.mrf.mxu1 }
  0xe5   : > { %v366_v51 = vadd.f32 %v365_v31, %v1342_v44  ;;  %1046 = vtanh.f32 %v362_v48 }
  0xe6   : > { %v367_v34 = vpop.f32.mrf.mxu0  ;;  %v1330_v35 = vpop.f32.mrf.mxu1 }
  0xe7   : > { %v368_v52 = vadd.f32 %v367_v34, %v1342_v44  ;;  %1048 = vtanh.f32 %v366_v51 }
  0xe8   : > { %v371_v37 = vpop.f32.mrf.mxu0  ;;  %v1334_v38 = vpop.f32.mrf.mxu1 }
  0xe9   : > { %v372_v55 = vadd.f32 %v371_v37, %v1328_v33  ;;  %1050 = vtanh.f32 %v368_v52 }
  0xea   : > { %v373_v39 = vpop.f32.mrf.mxu0  ;;  %v1336_v40 = vpop.f32.mrf.mxu1 }
  0xeb   : > { %v374_v56 = vadd.f32 %v373_v39, %v1328_v33  ;;  %1052 = vtanh.f32 %v372_v55 }
  0xec   : > { %v377_v42 = vpop.f32.mrf.mxu0  ;;  %v1340_v43 = vpop.f32.mrf.mxu1 }
  0xed   : > { %v378_v59 = vadd.f32 %v377_v42, %v1332_v36  ;;  %1054 = vtanh.f32 %v374_v56  ;;  %v487_v51 = vadd.f32 %v1340_v43, %v1328_v33  ;;  %v475_v43 = vadd.f32 %v1326_v32, %v1338_v41 }
  0xee   : > { %v379_v45 = vpop.f32.mrf.mxu0  ;;  %v1344_v46 = vpop.f32.mrf.mxu1 }
  0xef   : > { %v380_v60 = vadd.f32 %v379_v45, %v1332_v36  ;;  %1056 = vtanh.f32 %v378_v59 }
  0xf0   : > { %v383_v49 = vpop.f32.mrf.mxu0  ;;  %v1348_v50 = vpop.f32.mrf.mxu1 }
  0xf1   : > { %v384_v63 = vadd.f32 %v383_v49, %v1320_v26  ;;  %1058 = vtanh.f32 %v380_v60  ;;  %v1364_v16 = vpop.eup %1044  ;;  %v493_v47 = vadd.f32 %v1348_v50, %v1332_v36  ;;  %v491_v49 = vadd.f32 %v1344_v46, %v1332_v36 }
  0xf2   : > { %v385_v53 = vpop.f32.mrf.mxu0  ;;  %v496_v54 = vpop.f32.mrf.mxu1  ;;  %v481_v50 = vadd.f32 %v1334_v38, %v1342_v44  ;;  %v479_v36 = vadd.f32 %v1330_v35, %v1342_v44 }
  0xf3   : > { %v386_v0 = vadd.f32 %v385_v53, %v1320_v26  ;;  %1060 = vtanh.f32 %v384_v63  ;;  %v1367_v19 = vpop.eup %1046  ;;  %v497_v45 = vadd.f32 %v496_v54, %v1320_v26 }
  0xf4   : > { %v389_v57 = vpop.f32.mrf.mxu0  ;;  %v498_v58 = vpop.f32.mrf.mxu1 }
  0xf5   : > { %v390_v4 = vadd.f32 %v389_v57, %v1316_v24  ;;  %1062 = vtanh.f32 %v386_v0  ;;  %v1371_v23 = vpop.eup %1048  ;;  %v499_v42 = vadd.f32 %v498_v58, %v1320_v26  ;;  %v485_v26 = vadd.f32 %v1336_v40, %v1328_v33 }
  0xf6   : > { %v391_v61 = vpop.f32.mrf.mxu0  ;;  %v502_v62 = vpop.f32.mrf.mxu1  ;;  %v473_v33 = vadd.f32 %v1324_v30, %v1338_v41 }
  0xf7   : > { %v392_v5 = vadd.f32 %v391_v61, %v1316_v24  ;;  %1064 = vtanh.f32 %v390_v4  ;;  %v1374_v29 = vpop.eup %1050  ;;  %v503_v37 = vadd.f32 %v502_v62, %v1316_v24 }
  0xf8   : > { %v395_v1 = vpop.f32.mrf.mxu0  ;;  %v504_v2 = vpop.f32.mrf.mxu1 }
  0xf9   : > { %v396_v8 = vadd.f32 %v395_v1, %v1322_v28  ;;  %1066 = vtanh.f32 %v392_v5  ;;  %v505_v31 = vadd.f32 %v504_v2, %v1316_v24  ;;  %v1377_v34 = vpop.eup %1052  ;;  %v554_v2 = vpop.permute.xlu0 %553 }
  0xfa   : > { %v397_v6 = vpop.f32.mrf.mxu0  ;;  %v508_v7 = vpop.f32.mrf.mxu1 }
  0xfb   : > { %v398_v12 = vadd.f32 %v397_v6, %v1322_v28  ;;  %1068 = vtanh.f32 %v396_v8  ;;  %v509_v27 = vadd.f32 %v508_v7, %v1322_v28  ;;  %v1380_v39 = vpop.eup %1054 }
  0xfc   : > { %v401_v9 = vpop.f32.mrf.mxu0  ;;  %v510_v10 = vpop.f32.mrf.mxu1 }
  0xfd   : > { %v402_v11 = vadd.f32 %v401_v9, %v1318_v25  ;;  %v511_v20 = vadd.f32 %v510_v10, %v1322_v28  ;;  %v714_v10 = vld [vmem:[%s1457_s0] sm:$0xff] }
  0xfe   : > { %v403_v13 = vpop.f32.mrf.mxu0  ;;  %v514_v14 = vpop.f32.mrf.mxu1 }
  0xff   : > { %v404_v15 = vadd.f32 %v403_v13, %v1318_v25  ;;  %1070 = vtanh.f32 %v402_v11  ;;  %v515_v17 = vadd.f32 %v514_v14, %v1318_v25 }
 0x100   : > { %v516_v18 = vpop.f32.mrf.mxu1 }
 0x101   : > { %1072 = vtanh.f32 %v404_v15  ;;  %v517_v21 = vadd.f32 %v516_v18, %v1318_v25  ;;  %v1057_v25 = vpop.eup %1056 }
 0x102   : > { %1074 = vtanh.f32 %v398_v12  ;;  %v1059_v28 = vpop.eup %1058 }
 0x103   : > { %1076 = vtanh.f32 %v517_v21  ;;  %v1061_v48 = vpop.eup %1060 }
 0x104   : > { %1078 = vtanh.f32 %v515_v17  ;;  %v1063_v24 = vpop.eup %1062 }
 0x105   : > { %1080 = vtanh.f32 %v511_v20  ;;  %v1065_v52 = vpop.eup %1064 }
 0x106   : > { %1082 = vtanh.f32 %v509_v27  ;;  %v1067_v53 = vpop.eup %1066 }
 0x107   : > { %1084 = vtanh.f32 %v505_v31 }
 0x108   : > { %1086 = vtanh.f32 %v503_v37  ;;  %v1069_v54 = vpop.eup %1068 }
 0x109   : > { %1088 = vtanh.f32 %v499_v42 }
 0x10a   : > { %1090 = vtanh.f32 %v497_v45 }
 0x10b   : > { %1092 = vtanh.f32 %v493_v47 }
 0x10c   : > { %1094 = vtanh.f32 %v491_v49  ;;  %v1071_v46 = vpop.eup %1070 }
 0x10d   : > { %1096 = vtanh.f32 %v487_v51 }
 0x10e   : > { %v1073_v55 = vpop.eup %1072  ;;  %1098 = vtanh.f32 %v485_v26 }
 0x10f   : > { %v1075_v40 = vpop.eup %1074  ;;  %1100 = vtanh.f32 %v481_v50  ;;  %979 = vmatprep.subr.msk.mxu0 %vm559_vm2, %v1073_v55 }
 0x110   : > { %v1077_v38 = vpop.eup %1076  ;;  %1102 = vtanh.f32 %v479_v36  ;;  %980 = vmatpush1.msk.msra.mxu0 %vm559_vm2, %v1071_v46 }
 0x111   : > { %v1079_v35 = vpop.eup %1078  ;;  %1104 = vtanh.f32 %v475_v43  ;;  %590 = vmatprep.subr.mxu0 %v1075_v40  ;;  %982 = vmatprep.subr.msk.mxu1 %vm559_vm2, %v1077_v38 }
 0x112   : > { %v1081_v32 = vpop.eup %1080  ;;  %1106 = vtanh.f32 %v473_v33  ;;  %591 = vmatpush1.msra.mxu0 %v1069_v54  ;;  %983 = vmatpush1.msk.msra.mxu1 %vm559_vm2, %v1079_v35 }
 0x113   : > { %v1083_v30 = vpop.eup %1082  ;;  %592 = vmatprep.subr.mxu0 %v1067_v53  ;;  %661 = vmatprep.subr.mxu1 %v1081_v32 }
 0x114   : > { %v1085_v41 = vpop.eup %1084  ;;  %593 = vmatpush1.msra.mxu0 %v1065_v52  ;;  %662 = vmatpush1.msra.mxu1 %v1083_v30 }
 0x115   : > { %v1087_v44 = vpop.eup %1086  ;;  %594 = vmatprep.subr.mxu0 %v1063_v24  ;;  %663 = vmatprep.subr.mxu1 %v1085_v41 }
 0x116   : > { %v1089_v56 = vpop.eup %1088  ;;  %595 = vmatpush1.msra.mxu0 %v1061_v48  ;;  %664 = vmatpush1.msra.mxu1 %v1087_v44 }
 0x117   : > { %v1091_v57 = vpop.eup %1090  ;;  %596 = vmatprep.subr.mxu0 %v1059_v28  ;;  %665 = vmatprep.subr.mxu1 %v1089_v56 }
 0x118   : > { %v1093_v58 = vpop.eup %1092  ;;  %597 = vmatpush1.msra.mxu0 %v1057_v25  ;;  %666 = vmatpush1.msra.mxu1 %v1091_v57 }
 0x119   : > { %v1095_v59 = vpop.eup %1094  ;;  %598 = vmatprep.subr.mxu0 %v1380_v39  ;;  %667 = vmatprep.subr.mxu1 %v1093_v58 }
 0x11a   : > { %v1097_v60 = vpop.eup %1096  ;;  %599 = vmatpush1.msra.mxu0 %v1377_v34  ;;  %668 = vmatpush1.msra.mxu1 %v1095_v59 }
 0x11b   : > { %v1099_v61 = vpop.eup %1098  ;;  %600 = vmatprep.subr.mxu0 %v1374_v29  ;;  %669 = vmatprep.subr.mxu1 %v1097_v60 }
 0x11c   : > { %v1101_v62 = vpop.eup %1100  ;;  %601 = vmatpush1.msra.mxu0 %v1371_v23  ;;  %670 = vmatpush1.msra.mxu1 %v1099_v61 }
 0x11d   : > { %v1103_v63 = vpop.eup %1102  ;;  %602 = vmatprep.subr.mxu0 %v1367_v19  ;;  %671 = vmatprep.subr.mxu1 %v1101_v62 }
 0x11e   : > { %v1105_v0 = vpop.eup %1104  ;;  %603 = vmatpush1.msra.mxu0 %v1364_v16  ;;  %672 = vmatpush1.msra.mxu1 %v1103_v63 }
 0x11f   : > { %v1107_v1 = vpop.eup %1106  ;;  %673 = vmatprep.subr.mxu1 %v1105_v0  ;;  %981 = vmatmul.mubr.msk.f32.vlgmr.msra.gmra.mxu0 %vm556_vm3, %v1313_v22 }
 0x120   : > { %674 = vmatpush1.msra.mxu1 %v1107_v1  ;;  %796 = vmatprep.mubr.f32.mxu0 %v1171_v3 }
 0x121   : > { %984 = vmatmul.mubr.msk.f32.vlgmr.msra.gmra.mxu1 %vm556_vm3, %v1313_v22 }
 0x122   : > { %867 = vmatprep.mubr.f32.mxu1 %v1171_v3 }
 0x1df   : > { %v638_v4 = vpop.f32.mrf.mxu0 }
 0x1e0   : > { %v639_v6 = vadd.f32 %v638_v4, %v554_v2 }
 0x1e1   : > { %v709_v5 = vpop.f32.mrf.mxu1  ;;  %v640_v7 = vpop.f32.mrf.mxu0 }
 0x1e2   : > { %v641_v8 = vadd.f32 %v640_v7, %v554_v2  ;;  %v710_v22 = vadd.f32 %v709_v5, %v554_v2 }
 0x1e3   : > { %v711_v9 = vpop.f32.mrf.mxu1 }
 0x1e4   : > { %v712_v11 = vadd.f32 %v711_v9, %v554_v2  ;;  %985 = vmatprep.subr.msk.mxu0 %vm719_vm4, %v641_v8 }
 0x1e5   : > { %986 = vmatpush1.msk.msra.mxu0 %vm719_vm4, %v639_v6 }
 0x1e6   : > { %988 = vmatprep.subr.msk.mxu1 %vm719_vm4, %v712_v11  ;;  %987 = vmatmul.mubr.msk.f32.vlgmr.msra.gmra.mxu0 %vm715_vm5, %v714_v10 }
 0x1e7   : > { %989 = vmatpush1.msk.msra.mxu1 %vm719_vm4, %v710_v22 }
 0x1e8   : > { %990 = vmatmul.mubr.msk.f32.vlgmr.msra.gmra.mxu1 %vm715_vm5, %v714_v10 }
 0x2a6   : > { %v798_v3 = vpop.f32.mrf.mxu0 }
 0x2a7   : > { %874 = vst [vmem:[%s191_s12] sm:$0xff] %v798_v3 }
 0x2a8   : > { %v869_v12 = vpop.f32.mrf.mxu1  ;;  %v800_v13 = vpop.f32.mrf.mxu0 }
 0x2a9   : > { %876 = vst [vmem:[%s191_s12 + $0x10] sm:$0xff] %v869_v12  ;;  %875 = vst [vmem:[%s191_s12 + $0x8] sm:$0xff] %v800_v13 }
 0x2aa   : > { %v871_v14 = vpop.f32.mrf.mxu1 }
 0x2ab   : > { %877 = vst [vmem:[%s191_s12 + $0x18] sm:$0xff] %v871_v14 }
 0x2ac   : > { %1121 = shalt.err (!%p1118_p3)
}
 0x2ad   : > { %s1122_s30 = scalar_lea.hbm %s1422_s22, 512  ;;  %s1126_s7 = scalar_lea.hbm %s1461_s4, 1024 }
 0x2ae   : > { %p1123_p4 = scmp.ne.s32.totalorder %s1422_s22, %s1122_s30  ;;  %p1127_p9 = scmp.lt.s32.totalorder %s1422_s22, %s1461_s4 }
 0x2af   : > { %p1128_p10 = scmp.lt.s32.totalorder %s1126_s7, %s1122_s30 }
 0x2b0   : > { %p1124_p7 = pnand %p1123_p4, %p1238_p5 }
 0x2b1   : > { %p1129_p11 = por %p1128_p10, %p1127_p9 }
 0x2b2   : > { %p1125_p8 = pneg %p1124_p7 }
 0x2b4   : > { %p1130_p12 = pnand %p1129_p11, %p1125_p8 }
 0x2b6   : > { %1133 = shalt.err (!%p1130_p12)
}
 0x2b7   : > { %997 = dma.vmem_to_hbm [thread:$0]  (%p1238_p5), %s894_s13, 512, %s1422_s22, %s879_s23  }
 0x2b8 PF: > { %p1003_p13 = scmp.ge.s32.totalorder %s1168_s18, 2  ;;  %s905_s10 = sand.u32 1, %s1156_s15  }
 0x2b9   : > { %s906_s11 = scalar_lea.sflag [#allocation3], %s905_s10 }
 0x2ba   : > { %p1000_p0 = pnand %p1003_p13, %p1242_p6 }
 0x2bc   : > { %p1001_p1 = pneg %p1000_p0 }
 0x2be   : > { %1151 = dma.done.wait (%p1001_p1), %s906_s11, 512  }
 0x2bf   : > { %1153 = vsyncadd (%p1001_p1), %s906_s11, 4294966784  ;;  %p14_p2 = scmp.ge.s32.totalorder %s1225_s21, 4   ;;  %s1464_s15 = smov %s1160_s16 }
 0x2c0   : > { %s1465_s16 = smov %s1164_s17  ;;  %s1466_s17 = smov %s1236_s24 }
 0x2c1   : > { %s1467_s18 = smov %s1225_s21  ;;  %16 = sbr.rel (!%p14_p2) target bundleno = 3 (0x3), region = 71 }
 0x2c6   :  { %911 = vsyncpa [#allocation3], 1 }
 0x2c7   :  { %913 = vsyncpa [#allocation3 + $0x1], 1 }

</bundles_post_ra>
